<compile_context>
chip_gen: v7x
topology: tpu7x:2x2x1
jax: 0.10.0
libtpu: 0.0.40
codegen_flags: <defaults>
</compile_context>

<pallas_src>
import functools

import jax
import jax.numpy as jnp
from jax.experimental import pallas as pl
from jax.experimental.pallas import tpu as pltpu

EPS = 1e-6
_LANE = 128
_SUBLANE = 8
_MAX_TM = 1024   # rows per tile; >=512 rows saturates HBM BW for f32 streaming


def _round_up(n, m):
    return (n + m - 1) // m * m


def _vmem_capacity_bytes():
    try:
        return int(pltpu.get_tpu_info().vmem_capacity_bytes)
    except Exception:
        return 64 * 1024 * 1024   # conservative fallback: v7x per-TC VMEM


def _sublayer_connection_kernel(x_ref, gamma_ref, beta_ref, w_ref, b_ref,
                                out_ref, *, h, mxu_bf16):
    x = x_ref[...].astype(jnp.float32)                          # [TM, Hp]

    # --- LayerNorm, single reduction pass (PyTorch: unbiased std, sqrt(std^2 + eps)).
    # Padded lanes of x are zero, so sums over Hp equal sums over the true H.
    s1 = jnp.sum(x, axis=-1, keepdims=True)                     # sum(x)
    s2 = jnp.sum(x * x, axis=-1, keepdims=True)                 # sum(x^2)
    mean = s1 * (1.0 / h)
    var_unbiased = (s2 - mean * s1) * (1.0 / (h - 1))           # (s2 - h*mean^2)/(h-1)
    inv = jax.lax.rsqrt(var_unbiased + EPS)                     # 1/sqrt(std^2 + eps)
    # gamma/beta are zero in padded lanes -> normed is exactly 0 there.
    normed = gamma_ref[...] * ((x - mean) * inv) + beta_ref[...]

    # --- sublayer: Linear(H -> H) on the MXU.
    if mxu_bf16:   # only taken for large H; layernorm math above stays f32 (v5e-safe)
        sub = jnp.dot(normed.astype(jnp.bfloat16),
                      w_ref[...].astype(jnp.bfloat16),
                      preferred_element_type=jnp.float32)
    else:
        sub = jnp.dot(normed, w_ref[...], preferred_element_type=jnp.float32)
    sub = sub + b_ref[...]

    # --- dropout (eval mode => identity) + residual add.
    # TODO(synk): training-mode dropout would use pltpu.prng_seed/prng_random_bits.
    out_ref[...] = (x + sub).astype(out_ref.dtype)


@jax.jit
def sublayer_connection(x, gamma, beta, w, b):
    """x: [B, S, H]; gamma/beta/b: [H]; w: [H, H]."""
    B, S, H = x.shape
    M = B * S
    Hp = _round_up(H, _LANE)

    # Lane-dense padding (zero padding keeps layernorm/matmul math exact).
    x2d = x.reshape(M, H)
    if Hp != H:
        x2d = jnp.pad(x2d, ((0, 0), (0, Hp - H)))
    pad_vec = lambda v: jnp.pad(v.reshape(1, H).astype(jnp.float32),
                                ((0, 0), (0, Hp - H)))
    gamma_p, beta_p, b_p = pad_vec(gamma), pad_vec(beta), pad_vec(b)
    w_p = jnp.pad(w.astype(jnp.float32), ((0, Hp - H), (0, Hp - H)))

    # Tile size: as many rows as the per-generation VMEM budget allows.
    cap = _vmem_capacity_bytes()
    vmem_limit = min(cap * 3 // 4, 96 * 1024 * 1024)   # ~48 MiB on v7x, 96 MiB v5e/v6e
    budget = vmem_limit - (8 << 20)                    # headroom for compiler temps
    resident = 2 * Hp * Hp * 4 + 3 * 2 * Hp * 4        # w (2 bufs) + gamma/beta/b
    per_row = 4 * Hp * x.dtype.itemsize + 3 * Hp * 4   # x/out double-buffers + f32 temps
    avail = max(budget - resident, per_row * _SUBLANE)
    tm = max(_SUBLANE, min(_MAX_TM, avail // per_row) // _SUBLANE * _SUBLANE)
    tm = min(tm, _round_up(M, _SUBLANE))

    grid = (pl.cdiv(M, tm),)
    kernel = functools.partial(_sublayer_connection_kernel,
                               h=H, mxu_bf16=(H >= 512))

    out = pl.pallas_call(
        kernel,
        out_shape=jax.ShapeDtypeStruct((M, Hp), x.dtype),
        grid=grid,
        in_specs=[
            pl.BlockSpec((tm, Hp), lambda i: (i, 0)),     # x: streamed row tiles
            pl.BlockSpec((1, Hp), lambda i: (0, 0)),      # gamma: resident
            pl.BlockSpec((1, Hp), lambda i: (0, 0)),      # beta:  resident
            pl.BlockSpec((Hp, Hp), lambda i: (0, 0)),     # w:     resident
            pl.BlockSpec((1, Hp), lambda i: (0, 0)),      # b:     resident
        ],
        out_specs=pl.BlockSpec((tm, Hp), lambda i: (i, 0)),
        input_output_aliases={0: 0},                      # reuse padded-x HBM slab
        compiler_params=pltpu.CompilerParams(
            dimension_semantics=("parallel",),
            vmem_limit_bytes=vmem_limit,
        ),
    )(x2d, gamma_p, beta_p, w_p, b_p)

    return out[:, :H].reshape(B, S, H)


if __name__ == "__main__":
    B, S, H = 2, 8, 32

    key = jax.random.PRNGKey(0)
    kx, kw, kb, kg, kbe = jax.random.split(key, 5)

    x = jax.random.normal(kx, (B, S, H), dtype=jnp.float32)

    # LayerNorm parameters (perturbed from the ones/zeros init so the gamma/beta
    # paths -- including the lane padding -- are actually exercised).
    gamma = 1.0 + 0.1 * jax.random.normal(kg, (H,), dtype=jnp.float32)
    beta = 0.1 * jax.random.normal(kbe, (H,), dtype=jnp.float32)

    # Deterministic synthetic sublayer (Linear H -> H).
    w = jax.random.normal(kw, (H, H), dtype=jnp.float32) * 0.05
    b = jax.random.normal(kb, (H,), dtype=jnp.float32) * 0.05

    out = sublayer_connection(x, gamma, beta, w, b)
    out = jax.block_until_ready(out)

    # Pure-JAX reference matching the PyTorch module exactly:
    # mean, unbiased std, a_2*(x-mean)/sqrt(std^2 + eps) + b_2, then x + Linear(...).
    mean = jnp.mean(x, axis=-1, keepdims=True)
    var_u = jnp.sum((x - mean) ** 2, axis=-1, keepdims=True) / (H - 1)
    normed = gamma * (x - mean) / jnp.sqrt(var_u + EPS) + beta
    ref = x + (normed @ w + b)
    assert jnp.allclose(out, ref, atol=1e-4, rtol=1e-4), "mismatch vs reference"

    print("KERNEL_OK")
</pallas_src>

<mosaic_0001>
module attributes {stable_mosaic.version = 11 : i64} {
  func.func @_sublayer_connection_kernel(%arg0: i32, %arg1: memref<16x128xf32, #tpu.memory_space<vmem>>, %arg2: memref<1x128xf32, #tpu.memory_space<vmem>>, %arg3: memref<1x128xf32, #tpu.memory_space<vmem>>, %arg4: memref<128x128xf32, #tpu.memory_space<vmem>>, %arg5: memref<1x128xf32, #tpu.memory_space<vmem>>, %arg6: memref<16x128xf32, #tpu.memory_space<vmem>>) attributes {dimension_semantics = [#tpu.dimension_semantics<parallel>], iteration_bounds = array<i64: 1>, scalar_prefetch = 0 : i64, scratch_operands = 0 : i64, tpu.core_type = #tpu.core_type<tc>, window_params = [{transform_indices = @transform_0, window_bounds = array<i64: 16, 128>}, {pipeline_mode = #tpu.pipeline_mode<synchronous>, transform_indices = @transform_1, window_bounds = array<i64: 1, 128>}, {pipeline_mode = #tpu.pipeline_mode<synchronous>, transform_indices = @transform_2, window_bounds = array<i64: 1, 128>}, {pipeline_mode = #tpu.pipeline_mode<synchronous>, transform_indices = @transform_3, window_bounds = array<i64: 128, 128>}, {pipeline_mode = #tpu.pipeline_mode<synchronous>, transform_indices = @transform_4, window_bounds = array<i64: 1, 128>}, {transform_indices = @transform_5, window_bounds = array<i64: 16, 128>}]} {
    %c0 = arith.constant 0 : index
    %c0_0 = arith.constant 0 : index
    %0 = vector.load %arg1[%c0, %c0_0] : memref<16x128xf32, #tpu.memory_space<vmem>>, vector<16x128xf32>
    %cst = arith.constant dense<0.000000e+00> : vector<16xf32>
    %1 = vector.multi_reduction <add>, %0, %cst [1] : vector<16x128xf32> to vector<16xf32>
    %2 = vector.shape_cast %1 : vector<16xf32> to vector<16x1xf32>
    %3 = arith.mulf %0, %0 : vector<16x128xf32>
    %cst_1 = arith.constant dense<0.000000e+00> : vector<16xf32>
    %4 = vector.multi_reduction <add>, %3, %cst_1 [1] : vector<16x128xf32> to vector<16xf32>
    %5 = vector.shape_cast %4 : vector<16xf32> to vector<16x1xf32>
    %cst_2 = arith.constant 3.125000e-02 : f32
    %6 = vector.broadcast %cst_2 : f32 to vector<16x1xf32>
    %7 = arith.mulf %2, %6 : vector<16x1xf32>
    %8 = arith.mulf %7, %2 : vector<16x1xf32>
    %9 = arith.subf %5, %8 : vector<16x1xf32>
    %cst_3 = arith.constant 0.0322580636 : f32
    %10 = vector.broadcast %cst_3 : f32 to vector<16x1xf32>
    %11 = arith.mulf %9, %10 : vector<16x1xf32>
    %cst_4 = arith.constant 9.99999997E-7 : f32
    %12 = vector.broadcast %cst_4 : f32 to vector<16x1xf32>
    %13 = arith.addf %11, %12 : vector<16x1xf32>
    %14 = math.rsqrt %13 : vector<16x1xf32>
    %c0_5 = arith.constant 0 : index
    %c0_6 = arith.constant 0 : index
    %15 = vector.load %arg2[%c0_5, %c0_6] : memref<1x128xf32, #tpu.memory_space<vmem>>, vector<1x128xf32>
    %16 = vector.broadcast %7 : vector<16x1xf32> to vector<16x128xf32>
    %17 = arith.subf %0, %16 : vector<16x128xf32>
    %18 = vector.broadcast %14 : vector<16x1xf32> to vector<16x128xf32>
    %19 = arith.mulf %17, %18 : vector<16x128xf32>
    %20 = vector.broadcast %15 : vector<1x128xf32> to vector<16x128xf32>
    %21 = arith.mulf %20, %19 : vector<16x128xf32>
    %c0_7 = arith.constant 0 : index
    %c0_8 = arith.constant 0 : index
    %22 = vector.load %arg3[%c0_7, %c0_8] : memref<1x128xf32, #tpu.memory_space<vmem>>, vector<1x128xf32>
    %23 = vector.broadcast %22 : vector<1x128xf32> to vector<16x128xf32>
    %24 = arith.addf %21, %23 : vector<16x128xf32>
    %c0_9 = arith.constant 0 : index
    %c0_10 = arith.constant 0 : index
    %25 = vector.load %arg4[%c0_9, %c0_10] : memref<128x128xf32, #tpu.memory_space<vmem>>, vector<128x128xf32>
    %cst_11 = arith.constant dense<0.000000e+00> : vector<16x128xf32>
    %26 = tpu.matmul %24, %25, %cst_11 {dimension_numbers = #tpu.dot_dimension_numbers<[1], [0], [0], [1], [0, 0, 1, 1], [], []>} : vector<16x128xf32>, vector<128x128xf32>, vector<16x128xf32> -> vector<16x128xf32>
    %c0_12 = arith.constant 0 : index
    %c0_13 = arith.constant 0 : index
    %27 = vector.load %arg5[%c0_12, %c0_13] : memref<1x128xf32, #tpu.memory_space<vmem>>, vector<1x128xf32>
    %28 = vector.broadcast %27 : vector<1x128xf32> to vector<16x128xf32>
    %29 = arith.addf %26, %28 : vector<16x128xf32>
    %30 = arith.addf %0, %29 : vector<16x128xf32>
    %c0_14 = arith.constant 0 : index
    %c0_15 = arith.constant 0 : index
    %31 = vector.load %arg6[%c0_14, %c0_15] : memref<16x128xf32, #tpu.memory_space<vmem>>, vector<16x128xf32>
    tpu.vector_store %arg6[%c0_14, %c0_15], %30 {strides = array<i32>} : memref<16x128xf32, #tpu.memory_space<vmem>>, vector<16x128xf32>,
    return
  }
  func.func @transform_0(%arg0: i32) -> (i32, i32) {
    %c0_i32 = arith.constant 0 : i32
    %c0_i32_0 = arith.constant 0 : i32
    return %arg0, %c0_i32 : i32, i32
  }
  func.func @transform_1(%arg0: i32) -> (i32, i32) {
    %c0_i32 = arith.constant 0 : i32
    %c0_i32_0 = arith.constant 0 : i32
    %c0_i32_1 = arith.constant 0 : i32
    return %c0_i32, %c0_i32_0 : i32, i32
  }
  func.func @transform_2(%arg0: i32) -> (i32, i32) {
    %c0_i32 = arith.constant 0 : i32
    %c0_i32_0 = arith.constant 0 : i32
    %c0_i32_1 = arith.constant 0 : i32
    return %c0_i32, %c0_i32_0 : i32, i32
  }
  func.func @transform_3(%arg0: i32) -> (i32, i32) {
    %c0_i32 = arith.constant 0 : i32
    %c0_i32_0 = arith.constant 0 : i32
    %c0_i32_1 = arith.constant 0 : i32
    return %c0_i32, %c0_i32_0 : i32, i32
  }
  func.func @transform_4(%arg0: i32) -> (i32, i32) {
    %c0_i32 = arith.constant 0 : i32
    %c0_i32_0 = arith.constant 0 : i32
    %c0_i32_1 = arith.constant 0 : i32
    return %c0_i32, %c0_i32_0 : i32, i32
  }
  func.func @transform_5(%arg0: i32) -> (i32, i32) {
    %c0_i32 = arith.constant 0 : i32
    %c0_i32_0 = arith.constant 0 : i32
    return %arg0, %c0_i32 : i32, i32
  }
}

</mosaic_0001>

<bundles_post_ra>
// kernel: sublayer_connection.1
= control target key start
LH: loop header
LB: loop body
LE: loop exit
PB: predicated region body
PF: predicated region fallthrough
CT: control target
= control target key end

     0   :  { %s377_s0 = inlined_call_operand.vmem [shape: f32[16,128], index: 0, kind: input, shape index: {}, may-alias: {0,5}]   ;;  %s378_s3 = inlined_call_operand.vmem [shape: f32[128,128], index: 3, kind: input, shape index: {}]   ;;  %s379_s1 = inlined_call_operand.vmem [shape: f32[1,128], index: 1, kind: input, shape index: {}]   ;;  %s380_s2 = inlined_call_operand.vmem [shape: f32[1,128], index: 2, kind: input, shape index: {}]   ;;  %s381_s4 = inlined_call_operand.vmem [shape: f32[1,128], index: 4, kind: input, shape index: {}]   ;;  %s382_s5 = inlined_call_operand.vmem [shape: f32[16,128], index: 5, kind: output, shape index: {}, may-alias: {0,5}]  }
   0x1   :  { %v297_v0 = vld [vmem:[%s377_s0] sm:$0xff]  ;;  %v67_v3 = vld [vmem:[%s378_s3 + $0x8] sm:$0xff]  ;;  %v68_v7 = vld [vmem:[%s378_s3 + $0x10] sm:$0xff] }
   0x2   :  { %v66_v1 = vld [vmem:[%s378_s3] sm:$0xff]  ;;  %22 = vadd.xlane.f32.xlu0 %v297_v0  ;;  %v26_v2 = vmul.f32 %v297_v0, %v297_v0  ;;  %v311_v4 = vld [vmem:[%s377_s0 + $0x8] sm:$0xff]  ;;  %v69_v8 = vld [vmem:[%s378_s3 + $0x18] sm:$0xff] }
   0x3   :  { %v228_v5 = vpack.c.bf16 %v67_v3, %v66_v1  ;;  %v27_v6 = vmul.f32 %v311_v4, %v311_v4  ;;  %v232_v9 = vpack.c.bf16 %v69_v8, %v68_v7  ;;  %v70_v10 = vld [vmem:[%s378_s3 + $0x20] sm:$0xff]  ;;  %v71_v11 = vld [vmem:[%s378_s3 + $0x28] sm:$0xff]  ;;  %v72_v13 = vld [vmem:[%s378_s3 + $0x30] sm:$0xff] }
   0x4   :  { %28 = vadd.xlane.f32.xlu1 %v26_v2  ;;  %v236_v12 = vpack.c.bf16 %v71_v11, %v70_v10  ;;  %v73_v14 = vld [vmem:[%s378_s3 + $0x38] sm:$0xff]  ;;  %v74_v16 = vld [vmem:[%s378_s3 + $0x40] sm:$0xff]  ;;  %v75_v17 = vld [vmem:[%s378_s3 + $0x48] sm:$0xff] }
   0x5   :  { %229 = vmatprep.subr.bf16.mxu0 %v228_v5  ;;  %v240_v15 = vpack.c.bf16 %v73_v14, %v72_v13  ;;  %v244_v18 = vpack.c.bf16 %v75_v17, %v74_v16  ;;  %v76_v19 = vld [vmem:[%s378_s3 + $0x50] sm:$0xff]  ;;  %v77_v20 = vld [vmem:[%s378_s3 + $0x58] sm:$0xff]  ;;  %v78_v21 = vld [vmem:[%s378_s3 + $0x60] sm:$0xff] }
   0x6   :  { %24 = vadd.xlane.f32.xlu0 %v311_v4  ;;  %231 = vmatpush3.bf16.msra.mxu0 %v228_v5  ;;  %v248_v22 = vpack.c.bf16 %v77_v20, %v76_v19  ;;  %v79_v23 = vld [vmem:[%s378_s3 + $0x68] sm:$0xff]  ;;  %v80_v25 = vld [vmem:[%s378_s3 + $0x70] sm:$0xff]  ;;  %v81_v26 = vld [vmem:[%s378_s3 + $0x78] sm:$0xff] }
   0x7   :  { %233 = vmatprep.subr.bf16.mxu0 %v232_v9  ;;  %v252_v24 = vpack.c.bf16 %v79_v23, %v78_v21  ;;  %v256_v27 = vpack.c.bf16 %v81_v26, %v80_v25  ;;  %v172_v44 = vld [vmem:[%s379_s1] ss:$0 sm:$0xff] }
   0x8   :  { %30 = vadd.xlane.f32.xlu1 %v27_v6  ;;  %v173_v46 = vld [vmem:[%s380_s2] ss:$0 sm:$0xff] }
   0x9   :  { %v174_v54 = vld [vmem:[%s381_s4] ss:$0 sm:$0xff] }
   0xa   :  { %235 = vmatpush3.bf16.msra.mxu0 %v232_v9 }
   0xb   :  { %237 = vmatprep.subr.bf16.mxu0 %v236_v12 }
   0xe   :  { %239 = vmatpush3.bf16.msra.mxu0 %v236_v12 }
   0xf   :  { %241 = vmatprep.subr.bf16.mxu0 %v240_v15 }
  0x12   :  { %243 = vmatpush3.bf16.msra.mxu0 %v240_v15 }
  0x13   :  { %245 = vmatprep.subr.bf16.mxu0 %v244_v18 }
  0x16   :  { %247 = vmatpush3.bf16.msra.mxu0 %v244_v18 }
  0x17   :  { %249 = vmatprep.subr.bf16.mxu0 %v248_v22 }
  0x1a   :  { %251 = vmatpush3.bf16.msra.mxu0 %v248_v22 }
  0x1b   :  { %253 = vmatprep.subr.bf16.mxu0 %v252_v24 }
  0x1e   :  { %255 = vmatpush3.bf16.msra.mxu0 %v252_v24 }
  0x1f   :  { %257 = vmatprep.subr.bf16.mxu0 %v256_v27 }
  0x22   :  { %259 = vmatpush3.bf16.msra.mxu0 %v256_v27 }
  0x8f   :  { %v23_v28 = vpop.xlane.xlu0 %22 }
  0x90   :  { %v32_v29 = vmul.f32 0.03125, %v23_v28 }
  0x91   :  { %v29_v30 = vpop.xlane.xlu1 %28 }
  0x92   :  { %v34_v31 = vmul.f32 %v32_v29, %v23_v28  ;;  %v45_v42 = vsub.f32 %v297_v0, %v32_v29 }
  0x93   :  { %v25_v32 = vpop.xlane.xlu0 %24 }
  0x94   :  { %v33_v33 = vmul.f32 0.03125, %v25_v32  ;;  %v36_v34 = vsub.f32 %v29_v30, %v34_v31 }
  0x95   :  { %v31_v35 = vpop.xlane.xlu1 %30 }
  0x96   :  { %v35_v36 = vmul.f32 %v33_v33, %v25_v32  ;;  %v38_v37 = vmul.f32 0.032258064, %v36_v34  ;;  %v46_v47 = vsub.f32 %v311_v4, %v33_v33 }
  0x98   :  { %v40_v38 = vadd.f32 1e-06, %v38_v37  ;;  %v37_v39 = vsub.f32 %v31_v35, %v35_v36 }
  0x9a   :  { %260 = vrsqrt.f32 %v40_v38  ;;  %v39_v40 = vmul.f32 0.032258064, %v37_v39 }
  0x9c   :  { %v41_v41 = vadd.f32 1e-06, %v39_v40 }
  0x9e   :  { %262 = vrsqrt.f32 %v41_v41 }
  0xa4   :  { %v261_v43 = vpop.eup %260 }
  0xa5   :  { %v47_v45 = vmul.f32 %v261_v43, %v45_v42 }
  0xa7   :  { %v55_v48 = vmul.f32 %v172_v44, %v47_v45 }
  0xa8   :  { %v263_v49 = vpop.eup %262 }
  0xa9   :  { %v48_v50 = vmul.f32 %v263_v49, %v46_v47  ;;  %v64_v51 = vadd.f32 %v173_v46, %v55_v48 }
  0xab   :  { %v56_v52 = vmul.f32 %v172_v44, %v48_v50  ;;  %225 = vmatprep.mubr.f32.mxu0 %v64_v51 }
  0xad   :  { %v65_v53 = vadd.f32 %v173_v46, %v56_v52 }
  0xaf   :  { %226 = vmatmul.mubr.f32.vlgmr.msra.gmra.mrb[0].mxu0 %v65_v53 }
 0x182   :  { %v227_v55 = vpop.f32.mrb[0].mxu0 }
 0x183   :  { %v161_v56 = vadd.f32 %v227_v55, %v174_v54  ;;  %v155_v57 = vpop.f32.mrb[1].mxu0 }
 0x184   :  { %v156_v58 = vadd.f32 %v174_v54, %v155_v57 }
 0x185   :  { %v165_v59 = vadd.f32 %v161_v56, %v311_v4 }
 0x186   :  { %v164_v60 = vadd.f32 %v156_v58, %v297_v0 }
 0x187   :  { %167 = vst [vmem:[%s382_s5 + $0x8] sm:$0xff] %v165_v59 }
 0x188   :  { %166 = vst [vmem:[%s382_s5] sm:$0xff] %v164_v60 }

</bundles_post_ra>
